<compile_context>
chip_gen: v6e
topology: v6e:2x2x1
jax: 0.10.0
libtpu: 0.0.40
codegen_flags: <defaults>
</compile_context>

<pallas_src>
import math
from functools import partial

import jax
import jax.numpy as jnp
from jax.experimental import pallas as pl
from jax.experimental.pallas import tpu as pltpu


# ----------------------------------------------------------------------------
# Helpers
# ----------------------------------------------------------------------------
def _row_block(n_rows: int, target: int = 512) -> int:
    """Largest row-tile <= target that divides n_rows (and keeps sublane rules)."""
    if n_rows <= target:
        return n_rows
    for cand in range(target, 7, -1):
        if n_rows % cand == 0 and cand % 8 == 0:
            return cand
    return n_rows


_PARALLEL_1D = pltpu.CompilerParams(dimension_semantics=("parallel",))


def _layernorm_f32(y, g, b, eps):
    mu = jnp.mean(y, axis=-1, keepdims=True)
    c = y - mu
    var = jnp.mean(c * c, axis=-1, keepdims=True)
    return c * jax.lax.rsqrt(var + eps) * g + b


def _multihead_sdpa(q, k, v, *, nhead: int, scale: float):
    """q: (Lq, E), k/v: (Lk, E) fp32 values -> (Lq, E). Static loop over heads."""
    E = q.shape[-1]
    dh = E // nhead
    outs = []
    for h in range(nhead):
        q_h = q[:, h * dh:(h + 1) * dh]
        k_h = k[:, h * dh:(h + 1) * dh]
        v_h = v[:, h * dh:(h + 1) * dh]
        # (Lq, dh) @ (Lk, dh)^T -> (Lq, Lk)
        s = jax.lax.dot_general(q_h, k_h, (((1,), (1,)), ((), ())),
                                preferred_element_type=jnp.float32) * scale
        s = s - jnp.max(s, axis=-1, keepdims=True)
        p = jnp.exp(s)
        p = p * pl.reciprocal(jnp.sum(p, axis=-1, keepdims=True), approx=True)
        outs.append(jnp.dot(p, v_h, preferred_element_type=jnp.float32))
    return jnp.concatenate(outs, axis=-1)  # (Lq, E)


# ----------------------------------------------------------------------------
# Kernel 1: fused self-attention block (per batch)
#   LayerNorm1( x + OutProj( MHA( QKVProj(x) ) ) )
# ----------------------------------------------------------------------------
def _self_attn_block_kernel(x_ref, wqkv_ref, bqkv_ref, wout_ref, bout_ref,
                            g_ref, beta_ref, o_ref, *, nhead, scale, eps):
    x = x_ref[0].astype(jnp.float32)                                   # (S, E)
    E = x.shape[-1]
    qkv = jnp.dot(x, wqkv_ref[...].astype(jnp.float32),
                  preferred_element_type=jnp.float32)
    qkv = qkv + bqkv_ref[...].astype(jnp.float32)                      # (S, 3E)
    o = _multihead_sdpa(qkv[:, :E], qkv[:, E:2 * E], qkv[:, 2 * E:],
                        nhead=nhead, scale=scale)                      # (S, E)
    y = jnp.dot(o, wout_ref[...].astype(jnp.float32),
                preferred_element_type=jnp.float32)
    y = y + bout_ref[...].astype(jnp.float32) + x
    y = _layernorm_f32(y, g_ref[...].astype(jnp.float32),
                       beta_ref[...].astype(jnp.float32), eps)
    o_ref[0] = y.astype(o_ref.dtype)


def pallas_self_attn_block(x_bse, w_in_t, b_in, w_out_t, b_out, gamma, beta,
                           *, nhead: int, eps: float):
    B, S, E = x_bse.shape
    scale = 1.0 / math.sqrt(E // nhead)
    return pl.pallas_call(
        partial(_self_attn_block_kernel, nhead=nhead, scale=scale, eps=eps),
        out_shape=jax.ShapeDtypeStruct((B, S, E), x_bse.dtype),
        grid=(B,),
        in_specs=[
            pl.BlockSpec((1, S, E), lambda b: (b, 0, 0)),
            pl.BlockSpec((E, 3 * E), lambda b: (0, 0)),
            pl.BlockSpec((1, 3 * E), lambda b: (0, 0)),
            pl.BlockSpec((E, E), lambda b: (0, 0)),
            pl.BlockSpec((1, E), lambda b: (0, 0)),
            pl.BlockSpec((1, E), lambda b: (0, 0)),
            pl.BlockSpec((1, E), lambda b: (0, 0)),
        ],
        out_specs=pl.BlockSpec((1, S, E), lambda b: (b, 0, 0)),
        compiler_params=_PARALLEL_1D,
    )(x_bse, w_in_t, b_in.reshape(1, 3 * E), w_out_t, b_out.reshape(1, E),
      gamma.reshape(1, E), beta.reshape(1, E))


# ----------------------------------------------------------------------------
# Kernel 2: fused cross-attention block (per batch)
#   LayerNorm2( x + OutProj( MHA( QProj(x), KVProj(mem) ) ) )
# ----------------------------------------------------------------------------
def _cross_attn_block_kernel(x_ref, mem_ref, wq_ref, bq_ref, wkv_ref, bkv_ref,
                             wout_ref, bout_ref, g_ref, beta_ref, o_ref,
                             *, nhead, scale, eps):
    x = x_ref[0].astype(jnp.float32)                                   # (S, E)
    m = mem_ref[0].astype(jnp.float32)                                 # (Sm, E)
    E = x.shape[-1]
    q = jnp.dot(x, wq_ref[...].astype(jnp.float32),
                preferred_element_type=jnp.float32) + bq_ref[...].astype(jnp.float32)
    kv = jnp.dot(m, wkv_ref[...].astype(jnp.float32),
                 preferred_element_type=jnp.float32) + bkv_ref[...].astype(jnp.float32)
    o = _multihead_sdpa(q, kv[:, :E], kv[:, E:], nhead=nhead, scale=scale)  # (S, E)
    y = jnp.dot(o, wout_ref[...].astype(jnp.float32),
                preferred_element_type=jnp.float32)
    y = y + bout_ref[...].astype(jnp.float32) + x
    y = _layernorm_f32(y, g_ref[...].astype(jnp.float32),
                       beta_ref[...].astype(jnp.float32), eps)
    o_ref[0] = y.astype(o_ref.dtype)


def pallas_cross_attn_block(x_bse, mem_bse, wq_t, bq, wkv_t, bkv, w_out_t, b_out,
                            gamma, beta, *, nhead: int, eps: float):
    B, S, E = x_bse.shape
    Sm = mem_bse.shape[1]
    scale = 1.0 / math.sqrt(E // nhead)
    return pl.pallas_call(
        partial(_cross_attn_block_kernel, nhead=nhead, scale=scale, eps=eps),
        out_shape=jax.ShapeDtypeStruct((B, S, E), x_bse.dtype),
        grid=(B,),
        in_specs=[
            pl.BlockSpec((1, S, E), lambda b: (b, 0, 0)),
            pl.BlockSpec((1, Sm, E), lambda b: (b, 0, 0)),
            pl.BlockSpec((E, E), lambda b: (0, 0)),
            pl.BlockSpec((1, E), lambda b: (0, 0)),
            pl.BlockSpec((E, 2 * E), lambda b: (0, 0)),
            pl.BlockSpec((1, 2 * E), lambda b: (0, 0)),
            pl.BlockSpec((E, E), lambda b: (0, 0)),
            pl.BlockSpec((1, E), lambda b: (0, 0)),
            pl.BlockSpec((1, E), lambda b: (0, 0)),
            pl.BlockSpec((1, E), lambda b: (0, 0)),
        ],
        out_specs=pl.BlockSpec((1, S, E), lambda b: (b, 0, 0)),
        compiler_params=_PARALLEL_1D,
    )(x_bse, mem_bse, wq_t, bq.reshape(1, E), wkv_t, bkv.reshape(1, 2 * E),
      w_out_t, b_out.reshape(1, E), gamma.reshape(1, E), beta.reshape(1, E))


# ----------------------------------------------------------------------------
# Kernel 3: fused FFN block (row tiles over all tokens)
#   LayerNorm3( x + W2 @ ReLU(W1 @ x + b1) + b2 )
# ----------------------------------------------------------------------------
def _ffn_block_kernel(x_ref, w1_ref, b1_ref, w2_ref, b2_ref, g_ref, beta_ref,
                      o_ref, *, eps):
    x = x_ref[...].astype(jnp.float32)                                 # (tm, E)
    h = jnp.dot(x, w1_ref[...].astype(jnp.float32),
                preferred_element_type=jnp.float32) + b1_ref[...].astype(jnp.float32)
    h = jnp.maximum(h, 0.0)
    y = jnp.dot(h, w2_ref[...].astype(jnp.float32),
                preferred_element_type=jnp.float32)
    y = y + b2_ref[...].astype(jnp.float32) + x
    y = _layernorm_f32(y, g_ref[...].astype(jnp.float32),
                       beta_ref[...].astype(jnp.float32), eps)
    o_ref[...] = y.astype(o_ref.dtype)


def pallas_ffn_block(x, w1_t, b1, w2_t, b2, gamma, beta, *, eps: float):
    T, E = x.shape
    F = w1_t.shape[1]
    tm = _row_block(T)
    return pl.pallas_call(
        partial(_ffn_block_kernel, eps=eps),
        out_shape=jax.ShapeDtypeStruct((T, E), x.dtype),
        grid=(T // tm,),
        in_specs=[
            pl.BlockSpec((tm, E), lambda i: (i, 0)),
            pl.BlockSpec((E, F), lambda i: (0, 0)),
            pl.BlockSpec((1, F), lambda i: (0, 0)),
            pl.BlockSpec((F, E), lambda i: (0, 0)),
            pl.BlockSpec((1, E), lambda i: (0, 0)),
            pl.BlockSpec((1, E), lambda i: (0, 0)),
            pl.BlockSpec((1, E), lambda i: (0, 0)),
        ],
        out_specs=pl.BlockSpec((tm, E), lambda i: (i, 0)),
        compiler_params=_PARALLEL_1D,
    )(x, w1_t, b1.reshape(1, F), w2_t, b2.reshape(1, E),
      gamma.reshape(1, E), beta.reshape(1, E))


# ----------------------------------------------------------------------------
# Full decoder-layer forward (eval mode; dropout = identity, masks = None)
# ----------------------------------------------------------------------------
def light_transformer_decoder_layer(tgt, memory, params, *, nhead: int, eps: float = 1e-5):
    S, B, E = tgt.shape
    Sm = memory.shape[0]

    x = jnp.transpose(tgt, (1, 0, 2))        # (B, S, E)
    mem = jnp.transpose(memory, (1, 0, 2))   # (B, Sm, E)

    # -------- self-attention + residual + LayerNorm1 (one fused kernel) --------
    t1 = pallas_self_attn_block(
        x, params["sa_w_in"].T, params["sa_b_in"],
        params["sa_w_out"].T, params["sa_b_out"],
        params["ln1_g"], params["ln1_b"], nhead=nhead, eps=eps)

    # -------- cross-attention + residual + LayerNorm2 (one fused kernel) --------
    ca_wq_t = params["ca_w_in"][:E].T        # (E, E)
    ca_wkv_t = params["ca_w_in"][E:].T       # (E, 2E)
    ca_bq = params["ca_b_in"][:E]
    ca_bkv = params["ca_b_in"][E:]
    t2 = pallas_cross_attn_block(
        t1, mem, ca_wq_t, ca_bq, ca_wkv_t, ca_bkv,
        params["ca_w_out"].T, params["ca_b_out"],
        params["ln2_g"], params["ln2_b"], nhead=nhead, eps=eps)

    # -------- FFN + residual + LayerNorm3 (one fused kernel) --------
    out = pallas_ffn_block(
        t2.reshape(B * S, E), params["w1"].T, params["b1"],
        params["w2"].T, params["b2"],
        params["ln3_g"], params["ln3_b"], eps=eps)

    return jnp.transpose(out.reshape(B, S, E), (1, 0, 2))   # (S, B, E)


# ----------------------------------------------------------------------------
# Parameter init (torch layout: Linear weight is (out, in))
# ----------------------------------------------------------------------------
def init_params(key, d_model, dim_feedforward, dtype=jnp.float32):
    E, F = d_model, dim_feedforward
    ks = jax.random.split(key, 14)
    u = lambda k, shape, fan_in: jax.random.uniform(
        k, shape, minval=-1.0 / math.sqrt(fan_in), maxval=1.0 / math.sqrt(fan_in), dtype=dtype)
    return {
        "sa_w_in": u(ks[0], (3 * E, E), E), "sa_b_in": u(ks[1], (3 * E,), E),
        "sa_w_out": u(ks[2], (E, E), E),    "sa_b_out": u(ks[3], (E,), E),
        "ca_w_in": u(ks[4], (3 * E, E), E), "ca_b_in": u(ks[5], (3 * E,), E),
        "ca_w_out": u(ks[6], (E, E), E),    "ca_b_out": u(ks[7], (E,), E),
        "w1": u(ks[8], (F, E), E),          "b1": u(ks[9], (F,), E),
        "w2": u(ks[10], (E, F), F),         "b2": u(ks[11], (E,), F),
        "ln1_g": jnp.ones((E,), dtype), "ln1_b": jnp.zeros((E,), dtype),
        "ln2_g": jnp.ones((E,), dtype), "ln2_b": jnp.zeros((E,), dtype),
        "ln3_g": jnp.ones((E,), dtype), "ln3_b": jnp.zeros((E,), dtype),
    }


# ----------------------------------------------------------------------------
# Pure-JAX reference (mirrors torch eval-mode forward exactly)
# ----------------------------------------------------------------------------
_HI = jax.lax.Precision.HIGHEST


def _ref_mha(q_in, k_in, v_in, w_in, b_in, w_out, b_out, nhead):
    L, N, E = q_in.shape
    S = k_in.shape[0]
    dh = E // nhead
    wq, wk, wv = w_in[:E], w_in[E:2 * E], w_in[2 * E:]
    bq, bk, bv = b_in[:E], b_in[E:2 * E], b_in[2 * E:]
    q = jnp.einsum("lne,fe->lnf", q_in, wq, precision=_HI) + bq
    k = jnp.einsum("sne,fe->snf", k_in, wk, precision=_HI) + bk
    v = jnp.einsum("sne,fe->snf", v_in, wv, precision=_HI) + bv
    q = q.reshape(L, N * nhead, dh).transpose(1, 0, 2)
    k = k.reshape(S, N * nhead, dh).transpose(1, 0, 2)
    v = v.reshape(S, N * nhead, dh).transpose(1, 0, 2)
    s = jnp.einsum("bld,bsd->bls", q, k, precision=_HI) / math.sqrt(dh)
    p = jax.nn.softmax(s, axis=-1)
    o = jnp.einsum("bls,bsd->bld", p, v, precision=_HI)
    o = o.transpose(1, 0, 2).reshape(L, N, E)
    return jnp.einsum("lne,fe->lnf", o, w_out, precision=_HI) + b_out


def _ref_ln(x, g, b, eps=1e-5):
    mu = x.mean(-1, keepdims=True)
    var = ((x - mu) ** 2).mean(-1, keepdims=True)
    return (x - mu) / jnp.sqrt(var + eps) * g + b


def reference_forward(tgt, memory, params, *, nhead, eps=1e-5):
    t2 = _ref_mha(tgt, tgt, tgt, params["sa_w_in"], params["sa_b_in"],
                  params["sa_w_out"], params["sa_b_out"], nhead)
    t = _ref_ln(tgt + t2, params["ln1_g"], params["ln1_b"], eps)
    t2 = _ref_mha(t, memory, memory, params["ca_w_in"], params["ca_b_in"],
                  params["ca_w_out"], params["ca_b_out"], nhead)
    t = _ref_ln(t + t2, params["ln2_g"], params["ln2_b"], eps)
    h = jax.nn.relu(jnp.einsum("lne,fe->lnf", t, params["w1"], precision=_HI) + params["b1"])
    t2 = jnp.einsum("lnf,ef->lne", h, params["w2"], precision=_HI) + params["b2"]
    return _ref_ln(t + t2, params["ln3_g"], params["ln3_b"], eps)


# ----------------------------------------------------------------------------
# Demo / self-check
# ----------------------------------------------------------------------------
if __name__ == "__main__":
    S, B, E, H, FF = 8, 2, 32, 4, 64   # seq, batch, d_model, nhead, dim_feedforward
    Sm = 8                             # memory (encoder) sequence length

    key = jax.random.PRNGKey(0)
    k_tgt, k_mem, k_par = jax.random.split(key, 3)
    tgt = jax.random.normal(k_tgt, (S, B, E), dtype=jnp.float32)
    memory = jax.random.normal(k_mem, (Sm, B, E), dtype=jnp.float32)
    params = init_params(k_par, E, FF)

    out = light_transformer_decoder_layer(tgt, memory, params, nhead=H)
    out = jax.block_until_ready(out)

    ref = reference_forward(tgt, memory, params, nhead=H)
    assert out.shape == (S, B, E)
    assert jnp.allclose(out, ref, atol=1e-2, rtol=1e-2), float(jnp.abs(out - ref).max())

    print("KERNEL_OK")
</pallas_src>

<mosaic_0001>
module attributes {stable_mosaic.version = 11 : i64} {
  func.func @_self_attn_block_kernel(%arg0: i32, %arg1: memref<1x8x32xf32, #tpu.memory_space<vmem>>, %arg2: memref<32x96xf32, #tpu.memory_space<vmem>>, %arg3: memref<1x96xf32, #tpu.memory_space<vmem>>, %arg4: memref<32x32xf32, #tpu.memory_space<vmem>>, %arg5: memref<1x32xf32, #tpu.memory_space<vmem>>, %arg6: memref<1x32xf32, #tpu.memory_space<vmem>>, %arg7: memref<1x32xf32, #tpu.memory_space<vmem>>, %arg8: memref<1x8x32xf32, #tpu.memory_space<vmem>>) attributes {dimension_semantics = [#tpu.dimension_semantics<parallel>], iteration_bounds = array<i64: 2>, scalar_prefetch = 0 : i64, scratch_operands = 0 : i64, tpu.core_type = #tpu.core_type<tc>, window_params = [{transform_indices = @transform_0, window_bounds = array<i64: 1, 8, 32>}, {pipeline_mode = #tpu.pipeline_mode<synchronous>, transform_indices = @transform_1, window_bounds = array<i64: 32, 96>}, {pipeline_mode = #tpu.pipeline_mode<synchronous>, transform_indices = @transform_2, window_bounds = array<i64: 1, 96>}, {pipeline_mode = #tpu.pipeline_mode<synchronous>, transform_indices = @transform_3, window_bounds = array<i64: 32, 32>}, {pipeline_mode = #tpu.pipeline_mode<synchronous>, transform_indices = @transform_4, window_bounds = array<i64: 1, 32>}, {pipeline_mode = #tpu.pipeline_mode<synchronous>, transform_indices = @transform_5, window_bounds = array<i64: 1, 32>}, {pipeline_mode = #tpu.pipeline_mode<synchronous>, transform_indices = @transform_6, window_bounds = array<i64: 1, 32>}, {transform_indices = @transform_7, window_bounds = array<i64: 1, 8, 32>}]} {
    %c0 = arith.constant 0 : index
    %c0_0 = arith.constant 0 : index
    %c0_1 = arith.constant 0 : index
    %0 = vector.load %arg1[%c0, %c0_0, %c0_1] : memref<1x8x32xf32, #tpu.memory_space<vmem>>, vector<1x8x32xf32>
    %1 = vector.shape_cast %0 : vector<1x8x32xf32> to vector<8x32xf32>
    %c0_2 = arith.constant 0 : index
    %c0_3 = arith.constant 0 : index
    %2 = vector.load %arg2[%c0_2, %c0_3] : memref<32x96xf32, #tpu.memory_space<vmem>>, vector<32x96xf32>
    %cst = arith.constant dense<0.000000e+00> : vector<8x96xf32>
    %3 = tpu.matmul %1, %2, %cst {dimension_numbers = #tpu.dot_dimension_numbers<[1], [0], [0], [1], [0, 0, 1, 1], [], []>} : vector<8x32xf32>, vector<32x96xf32>, vector<8x96xf32> -> vector<8x96xf32>
    %c0_4 = arith.constant 0 : index
    %c0_5 = arith.constant 0 : index
    %4 = vector.load %arg3[%c0_4, %c0_5] : memref<1x96xf32, #tpu.memory_space<vmem>>, vector<1x96xf32>
    %5 = vector.broadcast %4 : vector<1x96xf32> to vector<8x96xf32>
    %6 = arith.addf %3, %5 : vector<8x96xf32>
    %7 = vector.extract_strided_slice %6 {offsets = [0, 0], sizes = [8, 32], strides = [1, 1]} : vector<8x96xf32> to vector<8x32xf32>
    %8 = vector.extract_strided_slice %6 {offsets = [0, 32], sizes = [8, 32], strides = [1, 1]} : vector<8x96xf32> to vector<8x32xf32>
    %9 = vector.extract_strided_slice %6 {offsets = [0, 64], sizes = [8, 32], strides = [1, 1]} : vector<8x96xf32> to vector<8x32xf32>
    %10 = vector.extract_strided_slice %7 {offsets = [0, 0], sizes = [8, 8], strides = [1, 1]} : vector<8x32xf32> to vector<8x8xf32>
    %11 = vector.extract_strided_slice %8 {offsets = [0, 0], sizes = [8, 8], strides = [1, 1]} : vector<8x32xf32> to vector<8x8xf32>
    %12 = vector.extract_strided_slice %9 {offsets = [0, 0], sizes = [8, 8], strides = [1, 1]} : vector<8x32xf32> to vector<8x8xf32>
    %cst_6 = arith.constant dense<0.000000e+00> : vector<8x8xf32>
    %13 = tpu.matmul %10, %11, %cst_6 {dimension_numbers = #tpu.dot_dimension_numbers<[1], [1], [0], [0], [0, 0, 1, 0], [], []>} : vector<8x8xf32>, vector<8x8xf32>, vector<8x8xf32> -> vector<8x8xf32>
    %cst_7 = arith.constant 0.353553385 : f32
    %14 = vector.broadcast %cst_7 : f32 to vector<8x8xf32>
    %15 = arith.mulf %13, %14 : vector<8x8xf32>
    %cst_8 = arith.constant dense<0xFF800000> : vector<8xf32>
    %16 = vector.multi_reduction <maximumf>, %15, %cst_8 [1] : vector<8x8xf32> to vector<8xf32>
    %17 = vector.shape_cast %16 : vector<8xf32> to vector<8x1xf32>
    %18 = vector.broadcast %17 : vector<8x1xf32> to vector<8x8xf32>
    %19 = arith.subf %15, %18 : vector<8x8xf32>
    %20 = math.exp %19 : vector<8x8xf32>
    %cst_9 = arith.constant dense<0.000000e+00> : vector<8xf32>
    %21 = vector.multi_reduction <add>, %20, %cst_9 [1] : vector<8x8xf32> to vector<8xf32>
    %22 = vector.shape_cast %21 : vector<8xf32> to vector<8x1xf32>
    %23 = tpu.reciprocal %22 {approx = true} : vector<8x1xf32> -> vector<8x1xf32>
    %24 = vector.broadcast %23 : vector<8x1xf32> to vector<8x8xf32>
    %25 = arith.mulf %20, %24 : vector<8x8xf32>
    %cst_10 = arith.constant dense<0.000000e+00> : vector<8x8xf32>
    %26 = tpu.matmul %25, %12, %cst_10 {dimension_numbers = #tpu.dot_dimension_numbers<[1], [0], [0], [1], [0, 0, 1, 1], [], []>} : vector<8x8xf32>, vector<8x8xf32>, vector<8x8xf32> -> vector<8x8xf32>
    %27 = vector.extract_strided_slice %7 {offsets = [0, 8], sizes = [8, 8], strides = [1, 1]} : vector<8x32xf32> to vector<8x8xf32>
    %28 = vector.extract_strided_slice %8 {offsets = [0, 8], sizes = [8, 8], strides = [1, 1]} : vector<8x32xf32> to vector<8x8xf32>
    %29 = vector.extract_strided_slice %9 {offsets = [0, 8], sizes = [8, 8], strides = [1, 1]} : vector<8x32xf32> to vector<8x8xf32>
    %cst_11 = arith.constant dense<0.000000e+00> : vector<8x8xf32>
    %30 = tpu.matmul %27, %28, %cst_11 {dimension_numbers = #tpu.dot_dimension_numbers<[1], [1], [0], [0], [0, 0, 1, 0], [], []>} : vector<8x8xf32>, vector<8x8xf32>, vector<8x8xf32> -> vector<8x8xf32>
    %cst_12 = arith.constant 0.353553385 : f32
    %31 = vector.broadcast %cst_12 : f32 to vector<8x8xf32>
    %32 = arith.mulf %30, %31 : vector<8x8xf32>
    %cst_13 = arith.constant dense<0xFF800000> : vector<8xf32>
    %33 = vector.multi_reduction <maximumf>, %32, %cst_13 [1] : vector<8x8xf32> to vector<8xf32>
    %34 = vector.shape_cast %33 : vector<8xf32> to vector<8x1xf32>
    %35 = vector.broadcast %34 : vector<8x1xf32> to vector<8x8xf32>
    %36 = arith.subf %32, %35 : vector<8x8xf32>
    %37 = math.exp %36 : vector<8x8xf32>
    %cst_14 = arith.constant dense<0.000000e+00> : vector<8xf32>
    %38 = vector.multi_reduction <add>, %37, %cst_14 [1] : vector<8x8xf32> to vector<8xf32>
    %39 = vector.shape_cast %38 : vector<8xf32> to vector<8x1xf32>
    %40 = tpu.reciprocal %39 {approx = true} : vector<8x1xf32> -> vector<8x1xf32>
    %41 = vector.broadcast %40 : vector<8x1xf32> to vector<8x8xf32>
    %42 = arith.mulf %37, %41 : vector<8x8xf32>
    %cst_15 = arith.constant dense<0.000000e+00> : vector<8x8xf32>
    %43 = tpu.matmul %42, %29, %cst_15 {dimension_numbers = #tpu.dot_dimension_numbers<[1], [0], [0], [1], [0, 0, 1, 1], [], []>} : vector<8x8xf32>, vector<8x8xf32>, vector<8x8xf32> -> vector<8x8xf32>
    %44 = vector.extract_strided_slice %7 {offsets = [0, 16], sizes = [8, 8], strides = [1, 1]} : vector<8x32xf32> to vector<8x8xf32>
    %45 = vector.extract_strided_slice %8 {offsets = [0, 16], sizes = [8, 8], strides = [1, 1]} : vector<8x32xf32> to vector<8x8xf32>
    %46 = vector.extract_strided_slice %9 {offsets = [0, 16], sizes = [8, 8], strides = [1, 1]} : vector<8x32xf32> to vector<8x8xf32>
    %cst_16 = arith.constant dense<0.000000e+00> : vector<8x8xf32>
    %47 = tpu.matmul %44, %45, %cst_16 {dimension_numbers = #tpu.dot_dimension_numbers<[1], [1], [0], [0], [0, 0, 1, 0], [], []>} : vector<8x8xf32>, vector<8x8xf32>, vector<8x8xf32> -> vector<8x8xf32>
    %cst_17 = arith.constant 0.353553385 : f32
    %48 = vector.broadcast %cst_17 : f32 to vector<8x8xf32>
    %49 = arith.mulf %47, %48 : vector<8x8xf32>
    %cst_18 = arith.constant dense<0xFF800000> : vector<8xf32>
    %50 = vector.multi_reduction <maximumf>, %49, %cst_18 [1] : vector<8x8xf32> to vector<8xf32>
    %51 = vector.shape_cast %50 : vector<8xf32> to vector<8x1xf32>
    %52 = vector.broadcast %51 : vector<8x1xf32> to vector<8x8xf32>
    %53 = arith.subf %49, %52 : vector<8x8xf32>
    %54 = math.exp %53 : vector<8x8xf32>
    %cst_19 = arith.constant dense<0.000000e+00> : vector<8xf32>
    %55 = vector.multi_reduction <add>, %54, %cst_19 [1] : vector<8x8xf32> to vector<8xf32>
    %56 = vector.shape_cast %55 : vector<8xf32> to vector<8x1xf32>
    %57 = tpu.reciprocal %56 {approx = true} : vector<8x1xf32> -> vector<8x1xf32>
    %58 = vector.broadcast %57 : vector<8x1xf32> to vector<8x8xf32>
    %59 = arith.mulf %54, %58 : vector<8x8xf32>
    %cst_20 = arith.constant dense<0.000000e+00> : vector<8x8xf32>
    %60 = tpu.matmul %59, %46, %cst_20 {dimension_numbers = #tpu.dot_dimension_numbers<[1], [0], [0], [1], [0, 0, 1, 1], [], []>} : vector<8x8xf32>, vector<8x8xf32>, vector<8x8xf32> -> vector<8x8xf32>
    %61 = vector.extract_strided_slice %7 {offsets = [0, 24], sizes = [8, 8], strides = [1, 1]} : vector<8x32xf32> to vector<8x8xf32>
    %62 = vector.extract_strided_slice %8 {offsets = [0, 24], sizes = [8, 8], strides = [1, 1]} : vector<8x32xf32> to vector<8x8xf32>
    %63 = vector.extract_strided_slice %9 {offsets = [0, 24], sizes = [8, 8], strides = [1, 1]} : vector<8x32xf32> to vector<8x8xf32>
    %cst_21 = arith.constant dense<0.000000e+00> : vector<8x8xf32>
    %64 = tpu.matmul %61, %62, %cst_21 {dimension_numbers = #tpu.dot_dimension_numbers<[1], [1], [0], [0], [0, 0, 1, 0], [], []>} : vector<8x8xf32>, vector<8x8xf32>, vector<8x8xf32> -> vector<8x8xf32>
    %cst_22 = arith.constant 0.353553385 : f32
    %65 = vector.broadcast %cst_22 : f32 to vector<8x8xf32>
    %66 = arith.mulf %64, %65 : vector<8x8xf32>
    %cst_23 = arith.constant dense<0xFF800000> : vector<8xf32>
    %67 = vector.multi_reduction <maximumf>, %66, %cst_23 [1] : vector<8x8xf32> to vector<8xf32>
    %68 = vector.shape_cast %67 : vector<8xf32> to vector<8x1xf32>
    %69 = vector.broadcast %68 : vector<8x1xf32> to vector<8x8xf32>
    %70 = arith.subf %66, %69 : vector<8x8xf32>
    %71 = math.exp %70 : vector<8x8xf32>
    %cst_24 = arith.constant dense<0.000000e+00> : vector<8xf32>
    %72 = vector.multi_reduction <add>, %71, %cst_24 [1] : vector<8x8xf32> to vector<8xf32>
    %73 = vector.shape_cast %72 : vector<8xf32> to vector<8x1xf32>
    %74 = tpu.reciprocal %73 {approx = true} : vector<8x1xf32> -> vector<8x1xf32>
    %75 = vector.broadcast %74 : vector<8x1xf32> to vector<8x8xf32>
    %76 = arith.mulf %71, %75 : vector<8x8xf32>
    %cst_25 = arith.constant dense<0.000000e+00> : vector<8x8xf32>
    %77 = tpu.matmul %76, %63, %cst_25 {dimension_numbers = #tpu.dot_dimension_numbers<[1], [0], [0], [1], [0, 0, 1, 1], [], []>} : vector<8x8xf32>, vector<8x8xf32>, vector<8x8xf32> -> vector<8x8xf32>
    %78 = tpu.concatenate %26, %43, %60, %77 in 1 : vector<8x8xf32>, vector<8x8xf32>, vector<8x8xf32>, vector<8x8xf32> -> vector<8x32xf32>
    %c0_26 = arith.constant 0 : index
    %c0_27 = arith.constant 0 : index
    %79 = vector.load %arg4[%c0_26, %c0_27] : memref<32x32xf32, #tpu.memory_space<vmem>>, vector<32x32xf32>
    %cst_28 = arith.constant dense<0.000000e+00> : vector<8x32xf32>
    %80 = tpu.matmul %78, %79, %cst_28 {dimension_numbers = #tpu.dot_dimension_numbers<[1], [0], [0], [1], [0, 0, 1, 1], [], []>} : vector<8x32xf32>, vector<32x32xf32>, vector<8x32xf32> -> vector<8x32xf32>
    %c0_29 = arith.constant 0 : index
    %c0_30 = arith.constant 0 : index
    %81 = vector.load %arg5[%c0_29, %c0_30] : memref<1x32xf32, #tpu.memory_space<vmem>>, vector<1x32xf32>
    %82 = vector.broadcast %81 : vector<1x32xf32> to vector<8x32xf32>
    %83 = arith.addf %80, %82 : vector<8x32xf32>
    %84 = arith.addf %83, %1 : vector<8x32xf32>
    %c0_31 = arith.constant 0 : index
    %c0_32 = arith.constant 0 : index
    %85 = vector.load %arg6[%c0_31, %c0_32] : memref<1x32xf32, #tpu.memory_space<vmem>>, vector<1x32xf32>
    %c0_33 = arith.constant 0 : index
    %c0_34 = arith.constant 0 : index
    %86 = vector.load %arg7[%c0_33, %c0_34] : memref<1x32xf32, #tpu.memory_space<vmem>>, vector<1x32xf32>
    %cst_35 = arith.constant dense<0.000000e+00> : vector<8xf32>
    %87 = vector.multi_reduction <add>, %84, %cst_35 [1] : vector<8x32xf32> to vector<8xf32>
    %88 = vector.shape_cast %87 : vector<8xf32> to vector<8x1xf32>
    %cst_36 = arith.constant 3.200000e+01 : f32
    %89 = vector.broadcast %cst_36 : f32 to vector<8x1xf32>
    %90 = arith.divf %88, %89 : vector<8x1xf32>
    %91 = vector.broadcast %90 : vector<8x1xf32> to vector<8x32xf32>
    %92 = arith.subf %84, %91 : vector<8x32xf32>
    %93 = arith.mulf %92, %92 : vector<8x32xf32>
    %cst_37 = arith.constant dense<0.000000e+00> : vector<8xf32>
    %94 = vector.multi_reduction <add>, %93, %cst_37 [1] : vector<8x32xf32> to vector<8xf32>
    %95 = vector.shape_cast %94 : vector<8xf32> to vector<8x1xf32>
    %cst_38 = arith.constant 3.200000e+01 : f32
    %96 = vector.broadcast %cst_38 : f32 to vector<8x1xf32>
    %97 = arith.divf %95, %96 : vector<8x1xf32>
    %cst_39 = arith.constant 9.99999974E-6 : f32
    %98 = vector.broadcast %cst_39 : f32 to vector<8x1xf32>
    %99 = arith.addf %97, %98 : vector<8x1xf32>
    %100 = math.rsqrt %99 : vector<8x1xf32>
    %101 = vector.broadcast %100 : vector<8x1xf32> to vector<8x32xf32>
    %102 = arith.mulf %92, %101 : vector<8x32xf32>
    %103 = vector.broadcast %85 : vector<1x32xf32> to vector<8x32xf32>
    %104 = arith.mulf %102, %103 : vector<8x32xf32>
    %105 = vector.broadcast %86 : vector<1x32xf32> to vector<8x32xf32>
    %106 = arith.addf %104, %105 : vector<8x32xf32>
    %c0_40 = arith.constant 0 : index
    %c0_41 = arith.constant 0 : index
    %c0_42 = arith.constant 0 : index
    %107 = vector.load %arg8[%c0_40, %c0_41, %c0_42] : memref<1x8x32xf32, #tpu.memory_space<vmem>>, vector<1x8x32xf32>
    %108 = vector.shape_cast %107 : vector<1x8x32xf32> to vector<8x32xf32>
    %109 = vector.shape_cast %106 : vector<8x32xf32> to vector<1x8x32xf32>
    tpu.vector_store %arg8[%c0_40, %c0_41, %c0_42], %109 {strides = array<i32>} : memref<1x8x32xf32, #tpu.memory_space<vmem>>, vector<1x8x32xf32>,
    return
  }
  func.func @transform_0(%arg0: i32) -> (i32, i32, i32) {
    %c0_i32 = arith.constant 0 : i32
    %c0_i32_0 = arith.constant 0 : i32
    %c0_i32_1 = arith.constant 0 : i32
    return %arg0, %c0_i32, %c0_i32_0 : i32, i32, i32
  }
  func.func @transform_1(%arg0: i32) -> (i32, i32) {
    %c0_i32 = arith.constant 0 : i32
    %c0_i32_0 = arith.constant 0 : i32
    %c0_i32_1 = arith.constant 0 : i32
    return %c0_i32, %c0_i32_0 : i32, i32
  }
  func.func @transform_2(%arg0: i32) -> (i32, i32) {
    %c0_i32 = arith.constant 0 : i32
    %c0_i32_0 = arith.constant 0 : i32
    %c0_i32_1 = arith.constant 0 : i32
    return %c0_i32, %c0_i32_0 : i32, i32
  }
  func.func @transform_3(%arg0: i32) -> (i32, i32) {
    %c0_i32 = arith.constant 0 : i32
    %c0_i32_0 = arith.constant 0 : i32
    %c0_i32_1 = arith.constant 0 : i32
    return %c0_i32, %c0_i32_0 : i32, i32
  }
  func.func @transform_4(%arg0: i32) -> (i32, i32) {
    %c0_i32 = arith.constant 0 : i32
    %c0_i32_0 = arith.constant 0 : i32
    %c0_i32_1 = arith.constant 0 : i32
    return %c0_i32, %c0_i32_0 : i32, i32
  }
  func.func @transform_5(%arg0: i32) -> (i32, i32) {
    %c0_i32 = arith.constant 0 : i32
    %c0_i32_0 = arith.constant 0 : i32
    %c0_i32_1 = arith.constant 0 : i32
    return %c0_i32, %c0_i32_0 : i32, i32
  }
  func.func @transform_6(%arg0: i32) -> (i32, i32) {
    %c0_i32 = arith.constant 0 : i32
    %c0_i32_0 = arith.constant 0 : i32
    %c0_i32_1 = arith.constant 0 : i32
    return %c0_i32, %c0_i32_0 : i32, i32
  }
  func.func @transform_7(%arg0: i32) -> (i32, i32, i32) {
    %c0_i32 = arith.constant 0 : i32
    %c0_i32_0 = arith.constant 0 : i32
    %c0_i32_1 = arith.constant 0 : i32
    return %arg0, %c0_i32, %c0_i32_0 : i32, i32, i32
  }
}

</mosaic_0001>

<bundles_post_ra>
// kernel: tpu_custom_call.1
= control target key start
LH: loop header
LB: loop body
LE: loop exit
PB: predicated region body
PF: predicated region fallthrough
CT: control target
= control target key end

     0   :  { %s2010_s0 = inlined_call_operand.hbm [shape: f32[2,8,32], index: 0, kind: input, shape index: {}]   ;;  %s2011_s1 = inlined_call_operand.hbm [shape: f32[32,96], index: 1, kind: input, shape index: {}]   ;;  %s2012_s2 = inlined_call_operand.vmem [shape: f32[1,96], index: 2, kind: input, shape index: {}]   ;;  %s2013_s3 = inlined_call_operand.hbm [shape: f32[32,32], index: 3, kind: input, shape index: {}]   ;;  %s2014_s4 = inlined_call_operand.vmem [shape: f32[1,32], index: 4, kind: input, shape index: {}]   ;;  %s2015_s5 = inlined_call_operand.vmem [shape: f32[1,32], index: 5, kind: input, shape index: {}]   ;;  %s2016_s6 = inlined_call_operand.vmem [shape: f32[1,32], index: 6, kind: input, shape index: {}]   ;;  %s2017_s7 = inlined_call_operand.hbm [shape: f32[2,8,32], index: 7, kind: output, shape index: {}]  }
   0x1   :  { %2022 = sst [smem:[#allocation12_spill]] %s2011_s1 }
   0x2   :  { %2023 = sst [smem:[#allocation13_spill]] %s2013_s3 }
   0x3   :  { %12 = vsyncpa [#allocation3], 0 }
   0x4   :  { %14 = vsyncpa [#allocation3 + $0x1], 0 }
   0x5   :  { %15 = vsyncpa [#allocation6], 0 }
   0x6   :  { %16 = vsyncpa [#allocation4], 0 }
   0x7   :  { %18 = vsyncpa [#allocation4 + $0x1], 0  ;;  %s1746_s24 = smov 0   ;;  %s1748_s25 = smov 0  }
   0x8   :  { %s1750_s26 = smov 0   ;;  %s1752_s27 = smov 0  }
   0x9 LB: > { %s1767_s28 = sadd.s32 4294967295, %s1682_s27   ;;  %s1309_s29 = sadd.s32 4294967294, %s1682_s27   ;;  %s1682_s27 = sphi %s1752_s27, %s2043_s27   ;;  %s1678_s26 = sphi %s1750_s26, %s2042_s26   ;;  %s1674_s25 = sphi %s1748_s25, %s2041_s25   ;;  %s1670_s24 = sphi %s1746_s24, %s2040_s24  }
   0xa   : > { %p44_p0 = scmp.ne.s32.totalorder %s1674_s25, %s1670_s24  ;;  %p2018_p1 = scmp.eq.s32.totalorder %s1767_s28, 0 }
   0xb   : > { %p200_p3 = scmp.eq.s32.totalorder %s1309_s29, 1  ;;  %p1310_p5 = scmp.ge.s32.totalorder %s1682_s27, 1 }
   0xc   : > { %p1776_p4 = por %p2018_p1, %p44_p0  ;;  %p207_p7 = scmp.lt.s32.totalorder %s1682_s27, 3 }
   0xd   : > { %p1781_p6 = por %p200_p3, %p44_p0  ;;  %s1684_s10 = smov [#allocation5]  }
   0xe   : > { %s2024_s30 = scalar_select %p1776_p4, 1, 0 }
   0xf   : > { %s2025_s8 = scalar_select %p1781_p6, 1, 0 }
  0x10   : > { %p1786_p8 = pnand %p1310_p5, %p207_p7  ;;  %s219_s11 = sshll.u32 %s1684_s10, 4  ;;  %s220_s11 = int_to_ptr.vmem [resolvable:$true] %s219_s11 }
  0x11   : > { %s1685_s13 = smov [#allocation7]   ;;  %s1545_s15 = scalar_lea.vmem %s220_s11, 512 }
  0x12   : > { %s2026_s9 = scalar_select %p1786_p8, 1, 0 }
  0x13   : > { %p1443_p9 = pneg %p1786_p8  ;;  %s235_s14 = sshll.u32 %s1685_s13, 4  ;;  %s236_s14 = int_to_ptr.vmem [resolvable:$true] %s235_s14 }
  0x14   : > { %p1546_p13 = scmp.ne.s32.totalorder %s220_s11, %s1545_s15  ;;  %p1553_p5 = scmp.lt.s32.totalorder %s220_s11, %s220_s11 }
  0x15   : > { %p1795_p11 = pnand %p1443_p9, %p2018_p1  ;;  %p1554_p7 = scmp.lt.s32.totalorder %s1545_s15, %s1545_s15 }
  0x17   : > { %p1536_p12 = pneg %p1795_p11  ;;  %p1555_p10 = por %p1554_p7, %p1553_p5 }
  0x19   : > { %p1548_p0 = pnand %p1546_p13, %p1536_p12 }
  0x1b   : > { %p1549_p3 = pneg %p1548_p0 }
  0x1d   : > { %p1556_p9 = pnand %p1555_p10, %p1549_p3 }
  0x1f   : > { %1559 = shalt.err (!%p1556_p9)
}
  0x20   : > { %s1686_s16 = smov 128   ;;  %s1687_s17 = smov 8  }
  0x21   : > { %s2028_s1 = sld [smem:[#allocation12_spill]]  ;;  %s1571_s20 = scalar_lea.vmem %s236_s14, 512 }
  0x22   : > { %p1572_p1 = scmp.ne.s32.totalorder %s236_s14, %s1571_s20  ;;  %p1579_p2 = scmp.lt.s32.totalorder %s236_s14, %s236_s14 }
  0x23   : > { %p1580_p6 = scmp.lt.s32.totalorder %s1571_s20, %s1571_s20 }
  0x24   : > { %p1574_p13 = pnand %p1572_p1, %p1536_p12 }
  0x25   : > { %p1581_p5 = por %p1580_p6, %p1579_p2 }
  0x26   : > { %p1575_p0 = pneg %p1574_p13 }
  0x27   : > { %1446 = dma.hbm_to_vmem [thread:$0]  (!%p1795_p11), %s2028_s1, 512, %s220_s11, [#allocation6], %s1686_s16, %s1686_s16, %s1687_s17  }
  0x28   : > { %p1582_p10 = pnand %p1581_p5, %p1575_p0 }
  0x2a   : > { %1585 = shalt.err (!%p1582_p10)
}
  0x2b   : > { %s2029_s3 = sld [smem:[#allocation13_spill]]  ;;  %s1818_s23 = sadd.s32 1, %s1682_s27  }
  0x2c   : > { %s31_s29 = sadd.s32 1, %s1678_s26  ;;  %s28_s10 = ssub.s32 %s1682_s27, %s1818_s23 }
  0x2d   : > { %p38_p1 = scmp.ne.s32.totalorder %s1678_s26, %s1674_s25  ;;  %p29_p2 = scmp.eq.s32.totalorder %s28_s10, 0 }
  0x2e   : > { %p39_p6 = scmp.eq.s32.totalorder %s1682_s27, 0  ;;  %p2030_p12 = scmp.eq.s32.totalorder %s1767_s28, 1 }
  0x2f   : > { %p1460_p7 = scmp.lt.s32.totalorder %s1682_s27, 2  ;;  %s258_s13 = sand.u32 1, %s1678_s26  }
  0x30   : > { %p1828_p3 = por %p2030_p12, %p38_p1  ;;  %p40_p9 = por %p39_p6, %p38_p1 }
  0x31   : > { %1449 = dma.hbm_to_vmem [thread:$0]  (!%p1795_p11), %s2029_s3, 512, %s236_s14, [#allocation6], %s1686_s16, %s1686_s16, %s1687_s17  }
  0x32   : > { %s2031_s11 = scalar_select %p1828_p3, 1, 0 }
  0x33   : > { %s1834_s12 = scalar_select %p29_p2, %s1678_s26, %s31_s29  }
  0x34   : > { %s1314_s15 = sshll.u32 %s258_s13, 3  ;;  %s1315_s14 = sshll.u32 %s1682_s27, 7 }
  0x35   : > { %s1841_s18 = scalar_lea.hbm %s2010_s0, %s1315_s14  ;;  %s262_s19 = scalar_lea.vmem [#allocation2], %s1314_s15 }
  0x36   : > { %s269_s20 = sshll.u32 %s262_s19, 4  ;;  %p1843_p11 = pnand %p1460_p7, %p40_p9  ;;  %s270_s20 = int_to_ptr.vmem [resolvable:$true] %s269_s20 }
  0x37   : > { %s259_s22 = scalar_lea.sflag [#allocation3], %s258_s13  ;;  %s1586_s29 = scalar_lea.hbm %s1841_s18, 128 }
  0x38   : > { %p1587_p13 = scmp.ne.s32.totalorder %s1841_s18, %s1586_s29  ;;  %p1588_p0 = pneg %p1843_p11 }
  0x39   : > { %s1591_s16 = scalar_lea.hbm %s2010_s0, 256  ;;  %p1592_p1 = scmp.lt.s32.totalorder %s1841_s18, %s2010_s0 }
  0x3a   : > { %p1589_p5 = pnand %p1588_p0, %p1587_p13  ;;  %p1593_p2 = scmp.lt.s32.totalorder %s1591_s16, %s1586_s29 }
  0x3c   : > { %p1590_p10 = pneg %p1589_p5  ;;  %p1594_p6 = por %p1593_p2, %p1592_p1 }
  0x3e   : > { %p1595_p12 = pnand %p1594_p6, %p1590_p10 }
  0x40   : > { %1598 = shalt.err (!%p1595_p12)
}
  0x41   : > { %s1599_s19 = scalar_lea.vmem %s270_s20, 128  ;;  %s1688_s13 = smov [#allocation2]  }
  0x42   : > { %p1600_p7 = scmp.ne.s32.totalorder %s270_s20, %s1599_s19  ;;  %s1604_s1 = sshll.u32 %s1688_s13, 4  ;;  %s1605_s1 = int_to_ptr.vmem [resolvable:$false] %s1604_s1 }
  0x43   : > { %s1606_s3 = scalar_lea.vmem %s1605_s1, 256  ;;  %p1607_p13 = scmp.lt.s32.totalorder %s270_s20, %s1605_s1 }
  0x44   : > { %p1602_p9 = pnand %p1600_p7, %p1588_p0  ;;  %p1608_p5 = scmp.lt.s32.totalorder %s1606_s3, %s1599_s19 }
  0x46   : > { %p1603_p3 = pneg %p1602_p9  ;;  %p1609_p4 = por %p1608_p5, %p1607_p13 }
  0x48   : > { %p1610_p8 = pnand %p1609_p4, %p1603_p3 }
  0x4a   : > { %1613 = shalt.err (!%p1610_p8)
}
  0x4b   : > { %1453 = dma.hbm_to_vmem [thread:$0]  (!%p1843_p11), %s1841_s18, 128, %s270_s20, %s259_s22  }
  0x4c   : > { %p2033_p10 = scmp.ne.s32.totalorder %s2026_s9, 0 }
  0x4d   : > { %s1864_s29 = sand.u32 (!%p2033_p10), 1, %s1674_s25   ;;  %p2034_p4 = scmp.ne.s32.totalorder (!%p2033_p10), %s2024_s30, 0 }
  0x4e   : > { %278 = sbr.rel (%p2033_p10) target bundleno = 2300 (0x8fc), region = 48  ;;  %s1317_s10 = sshll.u32 (!%p2033_p10), %s1864_s29, 3 }
  0x4f   : > { %s281_s1 = scalar_lea.sflag (!%p2033_p10), [#allocation3], %s1864_s29  ;;  %s284_s3 = scalar_lea.vmem (!%p2033_p10), [#allocation2], %s1317_s10 }
  0x53   : > { %1657 = dma.done.wait (%p2034_p4), %s281_s1, 128  }
  0x54   : > { %1659 = vsyncadd (%p2034_p4), %s281_s1, 4294967168  ;;  %p2035_p8 = scmp.eq.s32.totalorder %s1767_s28, 0 }
  0x56   : > { %1661 = dma.done.wait (%p2035_p8), [#allocation6], 1024   ;;  %p2036_p3 = pmov %p2035_p8 }
  0x57   : > { %v1689_v0 = vmov 0.0   ;;  %vm1690_vm0 = vmmov 0   ;;  %v327_v1 = vld [vmem:[#allocation5 + $0x18] sm:$0xff]  ;;  %v326_v2 = vld [vmem:[#allocation5 + $0x10] sm:$0xff]  ;;  %v325_v3 = vld [vmem:[#allocation5 + $0x8] sm:$0xff]  ;;  %vm335_vm1 = vcmask 261120  }
  0x58   : > { %1663 = vsyncadd (%p2036_p3), [#allocation6], 4294966272  ;;  %1369 = vmatprep.subr.mxu0 %v1689_v0  ;;  %1377 = vmatprep.mubr.msk.f32.mxu0 %vm1690_vm0, %v1689_v0  ;;  %v324_v4 = vld [vmem:[#allocation5] sm:$0xff]  ;;  %v1886_v5 = vld [vmem:[%s284_s3] sm:$0xff]  ;;  %s1691_s18 = smov 64   ;;  %s1692_s20 = smov 96  }
  0x59   : > { %1380 = vmatprep.subr.mxu1 %v1689_v0  ;;  %1382 = vmatprep.mubr.msk.f32.mxu1 %vm1690_vm0, %v1689_v0  ;;  %v1321_v6 = vld [vmem:[%s2012_s2] ss:$0 sm:$0xff]  ;;  %s1693_s21 = smov 88   ;;  %s1694_s22 = smov 120   ;;  %vm412_vm2 = vcmask 64512   ;;  %vm1086_vm3 = vcmask 130048  }
  0x5a   : > { %1370 = vmatpush3.msra.mxu0 %v327_v1  ;;  %s1695_s14 = smov 80   ;;  %s1696_s16 = smov 72   ;;  %vm1088_vm4 = vcmask 195584  }
  0x5b   : > { %1371 = vmatprep.subr.mxu0 %v1689_v0  ;;  %s1697_s17 = smov 112   ;;  %s1698_s15 = smov 104  }
  0x5c   : > { %1372 = vmatpush3.msra.mxu0 %v326_v2  ;;  %s1699_s19 = smov 56   ;;  %s1700_s13 = smov 48  }
  0x5d   : > { %1373 = vmatprep.subr.mxu0 %v1689_v0  ;;  %s1701_s1 = smov 40   ;;  %s1702_s3 = smov 8  }
  0x5e   : > { %1374 = vmatpush3.msra.mxu0 %v325_v3  ;;  %s1703_s30 = smov 16   ;;  %s1704_s9 = smov 24  }
  0x5f   : > { %1375 = vmatprep.subr.mxu0 %v1689_v0  ;;  %p2037_p0 = scmp.ne.s32.totalorder %s2031_s11, 0 }
  0x60   : > { %1376 = vmatpush3.msra.mxu0 %v324_v4 }
  0x61   : > { %1378 = vmatmul.mubr.msk.f32.vlgmr.msra.gmra.mxu0 %vm335_vm1, %v1886_v5  ;;  %1400 = vmatprep.subr.mxu0 %v1689_v0 }
  0x62   : > { %1402 = vmatprep.mubr.msk.f32.mxu0 %vm1690_vm0, %v1689_v0 }
 0x121   : > { %v405_v7 = vpop.f32.mrf.mxu0 }
 0x122   : > { %v1897_v8 = vadd.f32 %v1321_v6, %v405_v7 }
 0x123   : > { %v1379_v9 = vpop.f32.mrf.mxu0 }
 0x124   : > { %499 = vrot.lane.b32.xlu1 %v1897_v8, %s1691_s18  ;;  %410 = vrot.lane.b32.xlu0 %v1897_v8, %s1692_s20  ;;  %v1093_v9 = vld [vmem:[#allocation7 + $0x18] sm:$0xff]  ;;  %s1705_s18 = smov [#allocation8]  }
 0x128   : > { %577 = vrot.lane.b32.xlu1 %v1897_v8, %s1693_s21 }
 0x12c   : > { %575 = vrot.lane.b32.xlu1 %v1897_v8, %s1694_s22 }
 0x130   : > { %743 = vrot.lane.b32.xlu1 %v1897_v8, %s1695_s14 }
 0x196   : > { %v500_v10 = vpop.permute.xlu1 %499  ;;  %v411_v11 = vpop.permute.xlu0 %410 }
 0x197   : > { %1381 = vmatpush3.xpose.msk.msra.mxu1 %vm412_vm2, %v411_v11  ;;  %v1091_v11 = vld [vmem:[#allocation7 + $0x8] sm:$0xff] }
 0x198   : > { %1385 = vmatprep.subr.mxu1 %v1689_v0 }
 0x19a   : > { %v578_v12 = vpop.permute.xlu1 %577  ;;  %1383 = vmatmul.mubr.msk.f32.vlgmr.msra.gmra.mxu1 %vm412_vm2, %v1897_v8 }
 0x19b   : > { %1386 = vmatpush3.msra.mxu1 %v500_v10  ;;  %1387 = vmatprep.mubr.msk.f32.mxu1 %vm1690_vm0, %v1689_v0  ;;  %v1092_v10 = vld [vmem:[#allocation7 + $0x10] sm:$0xff] }
 0x19c   : > { %1390 = vmatprep.subr.mxu1 %v1689_v0 }
 0x19e   : > { %v576_v13 = vpop.permute.xlu1 %575 }
 0x1a2   : > { %v744_v14 = vpop.permute.xlu1 %743 }
 0x1a3   : > { %1401 = vmatpush3.xpose.msk.msra.mxu0 %vm412_vm2, %v744_v14 }
 0x1a4   : > { %1410 = vmatprep.subr.mxu0 %v1689_v0 }
 0x25a   : > { %v483_v15 = vpop.f32.mrf.mxu1 }
 0x25b   : > { %v487_v16 = vmul.f32 0.35355338, %v483_v15 }
 0x25c   : > { %v1384_v17 = vpop.f32.mrf.mxu1 }
 0x25d   : > { %v488_v18 = vsel %vm412_vm2, %v487_v16, -inf }
 0x25e   : > { %489 = vmax.xlane.f32.xlu0 %v488_v18 }
 0x274   : > { %909 = vrot.lane.b32.xlu0 %v1897_v8, %s1696_s16 }
 0x2e7   : > { %v490_v19 = vpop.xlane.xlu0 %489 }
 0x2e8   : > { %v491_v20 = vsub.f32 %v487_v16, %v490_v19 }
 0x2ea   : > { %v492_v21 = vmul.f32 1.442695, %v491_v20 }
 0x2eb   : > { %v910_v26 = vpop.permute.xlu0 %909 }
 0x2ec   : > { %1516 = vpow2.f32 %v492_v21 }
 0x2f9   : > { %v1517_v22 = vpop.eup %1516 }
 0x2fa   : > { %v494_v23 = vsel %vm412_vm2, %v1517_v22, 0.0 }
 0x2fb   : > { %495 = vadd.xlane.f32.xlu1 %v494_v23 }
 0x30c   : > { %741 = vrot.lane.b32.xlu1 %v1897_v8, %s1697_s17  ;;  %s1340_s17 = sshll.u32 %s1767_s28, 7  ;;  %s1618_s28 = sshll.u32 %s1705_s18, 4  ;;  %s1619_s28 = int_to_ptr.vmem [resolvable:$false] %s1618_s28 }
 0x310   : > { %907 = vrot.lane.b32.xlu1 %v1897_v8, %s1698_s15  ;;  %s322_s15 = scalar_lea.vmem [#allocation8], %s1317_s10  ;;  %s1620_s10 = scalar_lea.vmem %s1619_s28, 256 }
 0x384   : > { %v496_v24 = vpop.xlane.xlu1 %495 }
 0x385   : > { %1518 = vrcp.f32 %v496_v24  ;;  %v1335_v24 = vld [vmem:[%s2014_s4] ss:$0 sm:$0xff] }
 0x388   : > { %v742_v25 = vpop.permute.xlu1 %741 }
 0x389   : > { %1403 = vmatmul.mubr.msk.f32.vlgmr.msra.gmra.mxu0 %vm412_vm2, %v742_v25 }
 0x38a   : > { %1411 = vmatpush3.xpose.msk.msra.mxu0 %vm412_vm2, %v910_v26  ;;  %1412 = vmatprep.mubr.msk.f32.mxu0 %vm1690_vm0, %v1689_v0 }
 0x38b   : > { %1420 = vmatprep.subr.mxu0 %v1689_v0 }
 0x38c   : > { %v908_v27 = vpop.permute.xlu1 %907 }
 0x38d   : > { %1413 = vmatmul.mubr.msk.f32.vlgmr.msra.gmra.mxu0 %vm412_vm2, %v908_v27 }
 0x38e   : > { %1428 = vmatprep.mubr.msk.f32.mxu0 %vm1690_vm0, %v1689_v0  ;;  %1421 = vmatpush3.msra.mxu0 %v1093_v9 }
 0x38f   : > { %1422 = vmatprep.subr.mxu0 %v1689_v0 }
 0x390   : > { %1423 = vmatpush3.msra.mxu0 %v1092_v10 }
 0x391   : > { %1424 = vmatprep.subr.mxu0 %v1689_v0 }
 0x392   : > { %v1519_v28 = vpop.eup %1518  ;;  %1425 = vmatpush3.msra.mxu0 %v1091_v11 }
 0x393   : > { %v498_v29 = vmul.f32 %v1519_v28, %v1517_v22  ;;  %1426 = vmatprep.subr.mxu0 %v1689_v0 }
 0x395   : > { %1388 = vmatmul.mubr.msk.f32.vlgmr.msra.gmra.mxu1 %vm412_vm2, %v498_v29 }
 0x396   : > { %1391 = vmatpush3.xpose.msk.msra.mxu1 %vm412_vm2, %v578_v12  ;;  %1392 = vmatprep.mubr.msk.f32.mxu1 %vm1690_vm0, %v1689_v0  ;;  %v1090_v12 = vld [vmem:[#allocation7] sm:$0xff] }
 0x397   : > { %1395 = vmatprep.subr.mxu1 %v1689_v0  ;;  %1427 = vmatpush3.msra.mxu0 %v1090_v12 }
 0x399   : > { %1393 = vmatmul.mubr.msk.f32.vlgmr.msra.gmra.mxu1 %vm412_vm2, %v576_v13 }
 0x39a   : > { %1397 = vmatprep.mubr.msk.f32.mxu1 %vm1690_vm0, %v1689_v0 }
 0x449   : > { %v815_v30 = vpop.f32.mrf.mxu0 }
 0x44a   : > { %v819_v31 = vmul.f32 0.35355338, %v815_v30 }
 0x44b   : > { %v1404_v32 = vpop.f32.mrf.mxu0 }
 0x44c   : > { %v820_v33 = vsel %vm412_vm2, %v819_v31, -inf }
 0x44d   : > { %821 = vmax.xlane.f32.xlu0 %v820_v33  ;;  %v981_v34 = vpop.f32.mrf.mxu0 }
 0x44e   : > { %v985_v41 = vmul.f32 0.35355338, %v981_v34 }
 0x44f   : > { %v1414_v35 = vpop.f32.mrf.mxu0 }
 0x450   : > { %v986_v43 = vsel %vm412_vm2, %v985_v41, -inf }
 0x455   : > { %v1935_v36 = vpop.f32.mrf.mxu1 }
 0x457   : > { %v1389_v37 = vpop.f32.mrf.mxu1 }
 0x459   : > { %v649_v38 = vpop.f32.mrf.mxu1 }
 0x45a   : > { %v653_v39 = vmul.f32 0.35355338, %v649_v38 }
 0x45b   : > { %v1394_v40 = vpop.f32.mrf.mxu1 }
 0x45c   : > { %v654_v42 = vsel %vm412_vm2, %v653_v39, -inf  ;;  %v1338_v40 = vld [vmem:[%s2016_s6] ss:$0 sm:$0xff] }
 0x45d   : > { %655 = vmax.xlane.f32.xlu1 %v654_v42 }
 0x461   : > { %987 = vmax.xlane.f32.xlu1 %v986_v43 }
 0x4d6   : > { %v822_v44 = vpop.xlane.xlu0 %821 }
 0x4d7   : > { %v823_v45 = vsub.f32 %v819_v31, %v822_v44 }
 0x4d9   : > { %v824_v46 = vmul.f32 1.442695, %v823_v45 }
 0x4db   : > { %1520 = vpow2.f32 %v824_v46 }
 0x4e6   : > { %v656_v47 = vpop.xlane.xlu1 %655 }
 0x4e7   : > { %v657_v55 = vsub.f32 %v653_v39, %v656_v47 }
 0x4e8   : > { %v1521_v48 = vpop.eup %1520 }
 0x4e9   : > { %v826_v49 = vsel %vm412_vm2, %v1521_v48, 0.0  ;;  %v658_v56 = vmul.f32 1.442695, %v657_v55 }
 0x4ea   : > { %827 = vadd.xlane.f32.xlu1 %v826_v49  ;;  %v988_v50 = vpop.xlane.xlu1 %987 }
 0x4eb   : > { %v989_v51 = vsub.f32 %v985_v41, %v988_v50 }
 0x4ed   : > { %v990_v52 = vmul.f32 1.442695, %v989_v51 }
 0x4ef   : > { %1522 = vpow2.f32 %v990_v52 }
 0x4f0   : > { %1524 = vpow2.f32 %v658_v56 }
 0x4fb   : > { %665 = vrot.lane.b32.xlu1 %v1897_v8, %s1699_s19  ;;  %s1220_s19 = sshll.u32 %s322_s15, 4  ;;  %s1221_s19 = int_to_ptr.vmem [resolvable:$true] %s1220_s19 }
 0x4fc   : > { %v1523_v53 = vpop.eup %1522  ;;  %p1621_p6 = scmp.lt.s32.totalorder %s1221_s19, %s1619_s28 }
 0x4fd   : > { %v992_v54 = vsel %vm412_vm2, %v1523_v53, 0.0  ;;  %v1525_v57 = vpop.eup %1524 }
 0x4fe   : > { %993 = vadd.xlane.f32.xlu0 %v992_v54  ;;  %v660_v58 = vsel %vm412_vm2, %v1525_v57, 0.0 }
 0x514   : > { %831 = vrot.lane.b32.xlu0 %v1897_v8, %s1700_s13 }
 0x51f   : > { %661 = vadd.xlane.f32.xlu1 %v660_v58 }
 0x530   : > { %997 = vrot.lane.b32.xlu1 %v1897_v8, %s1701_s1 }
 0x573   : > { %v828_v59 = vpop.xlane.xlu1 %827 }
 0x577   : > { %v666_v60 = vpop.permute.xlu1 %665 }
 0x578   : > { %1396 = vmatpush3.msra.mxu1 %v666_v60 }
 0x579   : > { %1405 = vmatprep.subr.mxu1 %v1689_v0 }
 0x587   : > { %v994_v62 = vpop.xlane.xlu0 %993 }
 0x58b   : > { %v832_v3 = vpop.permute.xlu0 %831 }
 0x5a8   : > { %v662_v61 = vpop.xlane.xlu1 %661 }
 0x5a9   : > { %1526 = vrcp.f32 %v662_v61 }
 0x5aa   : > { %1528 = vrcp.f32 %v828_v59 }
 0x5ab   : > { %1530 = vrcp.f32 %v994_v62 }
 0x5ac   : > { %v998_v7 = vpop.permute.xlu1 %997 }
 0x5b6   : > { %v1527_v63 = vpop.eup %1526 }
 0x5b7   : > { %v664_v1 = vmul.f32 %v1527_v63, %v1525_v57  ;;  %v1529_v2 = vpop.eup %1528 }
 0x5b8   : > { %v830_v4 = vmul.f32 %v1529_v2, %v1521_v48  ;;  %v1531_v6 = vpop.eup %1530 }
 0x5b9   : > { %1398 = vmatmul.mubr.msk.f32.vlgmr.msra.gmra.mxu1 %vm412_vm2, %v664_v1  ;;  %v996_v8 = vmul.f32 %v1531_v6, %v1523_v53 }
 0x5ba   : > { %1406 = vmatpush3.msra.mxu1 %v832_v3  ;;  %1407 = vmatprep.mubr.msk.f32.mxu1 %vm1690_vm0, %v1689_v0 }
 0x5bb   : > { %1415 = vmatprep.subr.mxu1 %v1689_v0 }
 0x5bd   : > { %1408 = vmatmul.mubr.msk.f32.vlgmr.msra.gmra.mxu1 %vm412_vm2, %v830_v4 }
 0x5be   : > { %1416 = vmatpush3.msra.mxu1 %v998_v7  ;;  %1417 = vmatprep.mubr.msk.f32.mxu1 %vm1690_vm0, %v1689_v0 }
 0x5c1   : > { %1418 = vmatmul.mubr.msk.f32.vlgmr.msra.gmra.mxu1 %vm412_vm2, %v996_v8 }
 0x679   : > { %v737_v13 = vpop.f32.mrf.mxu1 }
 0x67a   : > { %1074 = vrot.lane.b32.xlu1 %v737_v13, %s1702_s3  ;;  %s1218_s3 = scalar_lea.hbm %s2017_s7, %s1340_s17 }
 0x67b   : > { %v1399_v14 = vpop.f32.mrf.mxu1 }
 0x67d   : > { %v903_v15 = vpop.f32.mrf.mxu1 }
 0x67e   : > { %1078 = vrot.lane.b32.xlu0 %v903_v15, %s1703_s30  ;;  %s1207_s30 = scalar_lea.sflag [#allocation4], %s1864_s29 }
 0x67f   : > { %v1409_v16 = vpop.f32.mrf.mxu1 }
 0x681   : > { %v1069_v17 = vpop.f32.mrf.mxu1 }
 0x682   : > { %1082 = vrot.lane.b32.xlu1 %v1069_v17, %s1704_s9  ;;  %s1614_s9 = scalar_lea.vmem %s1221_s19, 128 }
 0x683   : > { %v1419_v18 = vpop.f32.mrf.mxu1  ;;  %p1615_p11 = scmp.ne.s32.totalorder %s1221_s19, %s1614_s9  ;;  %p1622_p12 = scmp.lt.s32.totalorder %s1620_s10, %s1614_s9 }
 0x685   : > { %p1616_p1 = pnand %p1615_p11, %p2037_p0  ;;  %p1623_p7 = por %p1622_p12, %p1621_p6 }
 0x687   : > { %p1617_p2 = pneg %p1616_p1 }
 0x689   : > { %p1624_p9 = pnand %p1623_p7, %p1617_p2 }
 0x6ec   : > { %v1075_v19 = vpop.permute.xlu1 %1074 }
 0x6ed   : > { %v1085_v0 = vsel %vm412_vm2, %v1935_v36, %v1075_v19 }
 0x6f0   : > { %v1079_v20 = vpop.permute.xlu0 %1078 }
 0x6f1   : > { %v1087_v21 = vsel %vm1086_vm3, %v1085_v0, %v1079_v20 }
 0x6f4   : > { %v1083_v22 = vpop.permute.xlu1 %1082 }
 0x6f5   : > { %v1089_v23 = vsel %vm1088_vm4, %v1087_v21, %v1083_v22 }
 0x6f6   : > { %1429 = vmatmul.mubr.msk.f32.vlgmr.msra.gmra.mxu0 %vm335_vm1, %v1089_v23 }
 0x7b6   : > { %v1170_v25 = vpop.f32.mrf.mxu0 }
 0x7b7   : > { %v1171_v26 = vadd.f32 %v1335_v24, %v1170_v25 }
 0x7b8   : > { %v1430_v27 = vpop.f32.mrf.mxu0 }
 0x7b9   : > { %v1174_v28 = vadd.f32 %v1171_v26, %v1886_v5  ;;  %v1337_v5 = vld [vmem:[%s2015_s5] ss:$0 sm:$0xff] }
 0x7bb   : > { %v1177_v29 = vsel %vm335_vm1, %v1174_v28, 0.0 }
 0x7bc   : > { %1178 = vadd.xlane.f32.xlu0 %v1177_v29 }
 0x845   : > { %v1179_v30 = vpop.xlane.xlu0 %1178 }
 0x846   : > { %v1181_v31 = vmul.f32 0.03125, %v1179_v30 }
 0x848   : > { %v1182_v32 = vsub.f32 %v1174_v28, %v1181_v31 }
 0x84a   : > { %v1183_v33 = vmul.f32 %v1182_v32, %v1182_v32 }
 0x84c   : > { %v1184_v34 = vsel %vm335_vm1, %v1183_v33, 0.0 }
 0x84d   : > { %1185 = vadd.xlane.f32.xlu1 %v1184_v34 }
 0x8d6   : > { %v1186_v35 = vpop.xlane.xlu1 %1185 }
 0x8d7   : > { %v1187_v36 = vmul.f32 0.03125, %v1186_v35 }
 0x8d9   : > { %v1188_v37 = vadd.f32 1e-05, %v1187_v36 }
 0x8db   : > { %1532 = vrsqrt.f32 %v1188_v37 }
 0x8e8   : > { %v1533_v38 = vpop.eup %1532 }
 0x8e9   : > { %v1190_v39 = vmul.f32 %v1533_v38, %v1182_v32 }
 0x8eb   : > { %v1197_v41 = vmul.f32 %v1337_v5, %v1190_v39 }
 0x8ed   : > { %v1204_v42 = vadd.f32 %v1338_v40, %v1197_v41 }
 0x8ef   : > { %1205 = vst.msk [vmem:[%s322_s15] sm:$0xff] %vm335_vm1, %v1204_v42 }
 0x8f0   : > { %1627 = shalt.err (!%p1624_p9)
}
 0x8f1   : > { %s1628_s20 = scalar_lea.hbm %s1218_s3, 128  ;;  %s1632_s22 = scalar_lea.hbm %s2017_s7, 256 }
 0x8f2   : > { %p1629_p13 = scmp.ne.s32.totalorder %s1218_s3, %s1628_s20  ;;  %p1633_p4 = scmp.lt.s32.totalorder %s1218_s3, %s2017_s7 }
 0x8f3   : > { %p1634_p8 = scmp.lt.s32.totalorder %s1632_s22, %s1628_s20 }
 0x8f4   : > { %p1630_p5 = pnand %p1629_p13, %p2037_p0 }
 0x8f5   : > { %p1635_p3 = por %p1634_p8, %p1633_p4 }
 0x8f6   : > { %p1631_p10 = pneg %p1630_p5 }
 0x8f8   : > { %p1636_p11 = pnand %p1635_p3, %p1631_p10 }
 0x8fa   : > { %1639 = shalt.err (!%p1636_p11)
}
 0x8fb   : > { %1441 = dma.vmem_to_hbm [thread:$0]  (%p2037_p0), %s1221_s19, 128, %s1218_s3, %s1207_s30  }
 0x8fc PF: > { %s1232_s17 = sand.u32 1, %s1670_s24   ;;  %p2038_p1 = scmp.ne.s32.totalorder %s2025_s8, 0 }
 0x8fd   : > { %p2039_p2 = scmp.ge.s32.totalorder %s1682_s27, 2  ;;  %s1233_s15 = scalar_lea.sflag [#allocation4], %s1232_s17 }
 0x8ff   : > { %p1455_p6 = pnand %p2039_p2, %p2038_p1 }
 0x901   : > { %p1456_p12 = pneg %p1455_p6 }
 0x903   : > { %1665 = dma.done.wait (%p1456_p12), %s1233_s15, 128  }
 0x904   : > { %1667 = vsyncadd (%p1456_p12), %s1233_s15, 4294967168  ;;  %p21_p7 = scmp.ge.s32.totalorder %s1818_s23, 4   ;;  %s2040_s24 = smov %s1674_s25 }
 0x905   : > { %s2041_s25 = smov %s1678_s26  ;;  %s2042_s26 = smov %s1834_s12 }
 0x906   : > { %s2043_s27 = smov %s1818_s23  ;;  %23 = sbr.rel (!%p21_p7) target bundleno = 9 (0x9), region = 101 }
 0x90b   :  { %1238 = vsyncpa [#allocation3], 1 }
 0x90c   :  { %1240 = vsyncpa [#allocation3 + $0x1], 1 }
 0x90d   :  { %1241 = vsyncpa [#allocation6], 1 }
 0x90e   :  { %1242 = vsyncpa [#allocation4], 1 }
 0x90f   :  { %1244 = vsyncpa [#allocation4 + $0x1], 1 }

</bundles_post_ra>
